<compile_context>
chip_gen: v7x
topology: tpu7x:2x2x1
jax: 0.10.0
libtpu: 0.0.40
codegen_flags: <defaults>
</compile_context>

<pallas_src>
import functools
import math

import jax
import jax.numpy as jnp
from jax.experimental import pallas as pl
from jax.experimental.pallas import tpu as pltpu


def _round_up(v, m):
    return ((v + m - 1) // m) * m


# ----------------------------- kernel ---------------------------------------


def _fc_kernel(x_ref, w1_ref, b1_ref, w2_ref, b2_ref, o_ref, acc_ref, *,
               activation, compute_dtype):
    """One (row-tile, d_ff-tile) grid step of  act(x @ W1 + b1) @ W2 + b2.

    Axis 0 = row tiles ("parallel"), axis 1 = d_ff tiles ("arbitrary").
    acc_ref is a (tm, d_model) f32 accumulator resident across axis 1.
    """
    k = pl.program_id(1)

    @pl.when(k == 0)
    def _init():
        acc_ref[...] = jnp.zeros_like(acc_ref)

    # Free VPU casts: MXU operands in bf16, accumulation in f32
    # (a no-op when weights are already stored bf16).
    x = x_ref[...].astype(compute_dtype)                           # (tm, d_model)
    h = jnp.dot(x, w1_ref[...].astype(compute_dtype),
                preferred_element_type=jnp.float32) + b1_ref[...]  # (tm, tff) f32
    if activation is not None:
        h = activation(h)
    acc_ref[...] += jnp.dot(h.astype(compute_dtype),
                            w2_ref[...].astype(compute_dtype),
                            preferred_element_type=jnp.float32)    # (tm, d_model)

    @pl.when(k == pl.num_programs(1) - 1)
    def _finalize():
        o_ref[...] = (acc_ref[...] + b2_ref[...]).astype(o_ref.dtype)


# ----------------------------- wrapper ---------------------------------------


def fully_connected(x, w1, b1, w2, b2, *, activation=None,
                    block_rows=256, block_ff=1024,
                    compute_dtype=jnp.bfloat16, out_dtype=None):
    """Fused two-layer MLP: activation(x @ w1 + b1) @ w2 + b2.

    x  : (..., d_model)
    w1 : (d_model, d_ff)   b1 : (d_ff,)
    w2 : (d_ff, d_model)   b2 : (d_model,)

    Weights should be passed in their storage dtype (bf16 recommended so no
    per-call HBM convert round-trip is emitted); the kernel casts tiles on the
    VPU for free.  For memory-bound decode shapes, pass x / request out_dtype
    in bf16 to halve activation DMA bytes.
    """
    orig_shape = x.shape
    d_model = orig_shape[-1]
    d_ff = w1.shape[1]
    out_dtype = x.dtype if out_dtype is None else jnp.dtype(out_dtype)

    n = math.prod(orig_shape[:-1]) if len(orig_shape) > 1 else 1
    x2 = x.reshape(n, d_model)

    # Biases as (1, dim) f32 rows (tiny; cast cost negligible).
    b1r = b1.reshape(1, d_ff).astype(jnp.float32)
    b2r = b2.reshape(1, d_model).astype(jnp.float32)

    # ---- row (M) tiling: "parallel" grid axis -------------------------------
    if n > block_rows:
        tm = block_rows
    elif n >= 16:
        # Split even a fits-in-one-tile problem into >= 2 row tiles (multiple
        # of 8 sublanes) so both v7x TensorCores get work.
        tm = _round_up(pl.cdiv(n, 2), 8)
    else:
        tm = n  # too few rows to split at 8-sublane granularity
    n_row_tiles = pl.cdiv(n, tm)  # ragged last tile -> masked output store

    # ---- d_ff tiling (reduction axis of the 2nd matmul): "arbitrary" --------
    if d_ff <= block_ff:
        tff = d_ff
    elif d_ff % block_ff == 0:
        tff = block_ff
    else:
        # Reduction axis must tile exactly (padded-K garbage would pollute the
        # accumulator): take the largest multiple-of-128 divisor <= block_ff.
        tff = d_ff
        cand = (block_ff // 128) * 128
        while cand >= 128:
            if d_ff % cand == 0:
                tff = cand
                break
            cand -= 128
    n_ff_tiles = d_ff // tff

    # ---- VMEM budget (double-buffered tiles + accumulator + live hidden) ----
    x_b, w1_b, w2_b = x2.dtype.itemsize, w1.dtype.itemsize, w2.dtype.itemsize
    o_b = jnp.dtype(out_dtype).itemsize
    vmem_need = (2 * tm * d_model * x_b            # x tile
                 + 2 * d_model * tff * w1_b        # W1 column slice
                 + 2 * tff * d_model * w2_b        # W2 row slice
                 + 2 * tff * 4 + d_model * 4       # biases
                 + 2 * tm * d_model * o_b          # out tile
                 + tm * d_model * 4                # f32 accumulator scratch
                 + tm * tff * 4)                   # live hidden slice
    # Cap at 48 MiB so v7x (64 MiB/TC) keeps headroom; floor gives compiler slack.
    # TODO(synk): for very large d_model, shrink block_ff so 2x weight slices fit.
    vmem_limit = int(min(max(2 * vmem_need, 16 * 1024 * 1024), 48 * 1024 * 1024))

    # ---- advisory cost estimate for the XLA scheduler ------------------------
    flops = 4 * n * d_model * d_ff
    transcendentals = 0 if activation in (None, jax.nn.relu) else n * d_ff
    bytes_accessed = (n * d_model * (x_b + o_b)
                      + n_row_tiles * d_model * d_ff * (w1_b + w2_b)
                      + d_ff * 4 + d_model * 4)

    kernel = functools.partial(_fc_kernel, activation=activation,
                               compute_dtype=compute_dtype)

    # NOTE: after ff-tiling, W1/W2/b1 slices vary with k and *want* the default
    # double-buffering to pipeline their DMA under MXU work; b2 is the only
    # constant-index input left and at d_model*4 bytes is not worth a
    # pipeline_mode override.
    out = pl.pallas_call(
        kernel,
        out_shape=jax.ShapeDtypeStruct((n, d_model), out_dtype),
        grid=(n_row_tiles, n_ff_tiles),
        in_specs=[
            pl.BlockSpec((tm, d_model), lambda i, k: (i, 0)),   # x rows (const in k)
            pl.BlockSpec((d_model, tff), lambda i, k: (0, k)),  # W1 column slice
            pl.BlockSpec((1, tff), lambda i, k: (0, k)),        # b1 slice
            pl.BlockSpec((tff, d_model), lambda i, k: (k, 0)),  # W2 row slice
            pl.BlockSpec((1, d_model), lambda i, k: (0, 0)),    # b2
        ],
        out_specs=pl.BlockSpec((tm, d_model), lambda i, k: (i, 0)),
        scratch_shapes=[pltpu.VMEM((tm, d_model), jnp.float32)],
        compiler_params=pltpu.CompilerParams(
            dimension_semantics=("parallel", "arbitrary"),
            vmem_limit_bytes=vmem_limit),
        cost_estimate=pl.CostEstimate(flops=flops,
                                      transcendentals=transcendentals,
                                      bytes_accessed=bytes_accessed),
    )(x2, w1, b1r, w2, b2r)

    return out.reshape(orig_shape[:-1] + (d_model,))


# ----------------------------- main ------------------------------------------


if __name__ == "__main__":
    B, S = 2, 8
    d_model, d_ff = 128, 256   # lane-dense (multiples of 128) even at demo size

    key = jax.random.PRNGKey(0)
    ks = jax.random.split(key, 5)

    def rnd(k, shape, scale=0.1):
        return (scale * jax.random.normal(k, shape)).astype(jnp.float32)

    w1 = rnd(ks[0], (d_model, d_ff))
    b1 = rnd(ks[1], (d_ff,))
    w2 = rnd(ks[2], (d_ff, d_model))
    b2 = rnd(ks[3], (d_model,))
    x = rnd(ks[4], (B, S, d_model), scale=1.0)

    # Weights stored in bf16 ONCE, outside the jitted forward path
    # (no per-call HBM convert inside the kernel call).
    w1_bf = w1.astype(jnp.bfloat16)
    w2_bf = w2.astype(jnp.bfloat16)

    def reference(xx, act):
        h = xx @ w1_bf.astype(jnp.float32) + b1
        if act is not None:
            h = act(h)
        return h @ w2_bf.astype(jnp.float32) + b2

    # Typical configuration: activation = ReLU.
    fwd = jax.jit(functools.partial(fully_connected, activation=jax.nn.relu))
    out = jax.block_until_ready(fwd(x, w1_bf, b1, w2_bf, b2))
    assert out.shape == (B, S, d_model)
    assert jnp.allclose(out, reference(x, jax.nn.relu), atol=5e-2, rtol=5e-2), \
        "relu path mismatch"

    # Default activation=None path; force 2 d_ff tiles to exercise the
    # "arbitrary" reduction axis + accumulator loop.
    fwd_id = jax.jit(functools.partial(fully_connected, block_ff=128))
    out2 = jax.block_until_ready(fwd_id(x, w1_bf, b1, w2_bf, b2))
    assert out2.shape == (B, S, d_model)
    assert jnp.allclose(out2, reference(x, None), atol=5e-2, rtol=5e-2), \
        "identity path mismatch"

    print("KERNEL_OK")
</pallas_src>

<mosaic_0001>
module attributes {stable_mosaic.version = 11 : i64} {
  func.func @_fc_kernel(%arg0: i32, %arg1: i32, %arg2: memref<8x128xf32, #tpu.memory_space<vmem>>, %arg3: memref<128x256xbf16, #tpu.memory_space<vmem>>, %arg4: memref<1x256xf32, #tpu.memory_space<vmem>>, %arg5: memref<256x128xbf16, #tpu.memory_space<vmem>>, %arg6: memref<1x128xf32, #tpu.memory_space<vmem>>, %arg7: memref<8x128xf32, #tpu.memory_space<vmem>>, %arg8: memref<8x128xf32, #tpu.memory_space<vmem>>) attributes {dimension_semantics = [#tpu.dimension_semantics<parallel>, #tpu.dimension_semantics<arbitrary>], iteration_bounds = array<i64: 2, 1>, scalar_prefetch = 0 : i64, scratch_operands = 1 : i64, tpu.core_type = #tpu.core_type<tc>, window_params = [{transform_indices = @transform_0, window_bounds = array<i64: 8, 128>}, {transform_indices = @transform_1, window_bounds = array<i64: 128, 256>}, {transform_indices = @transform_2, window_bounds = array<i64: 1, 256>}, {transform_indices = @transform_3, window_bounds = array<i64: 256, 128>}, {pipeline_mode = #tpu.pipeline_mode<synchronous>, transform_indices = @transform_4, window_bounds = array<i64: 1, 128>}, {transform_indices = @transform_5, window_bounds = array<i64: 8, 128>}]} {
    %c0_i32 = arith.constant 0 : i32
    %0 = arith.cmpi eq, %arg1, %c0_i32 : i32
    %1 = arith.extui %0 : i1 to i32
    %c0_i32_0 = arith.constant 0 : i32
    %2 = arith.cmpi ne, %1, %c0_i32_0 : i32
    scf.if %2 {
      %cst_16 = arith.constant 0.000000e+00 : f32
      %21 = vector.broadcast %cst_16 : f32 to vector<8x128xf32>
      %c0_17 = arith.constant 0 : index
      %c0_18 = arith.constant 0 : index
      %22 = vector.load %arg8[%c0_17, %c0_18] : memref<8x128xf32, #tpu.memory_space<vmem>>, vector<8x128xf32>
      tpu.vector_store %arg8[%c0_17, %c0_18], %21 {strides = array<i32>} : memref<8x128xf32, #tpu.memory_space<vmem>>, vector<8x128xf32>,
    } else {
    }
    %c0 = arith.constant 0 : index
    %c0_1 = arith.constant 0 : index
    %3 = vector.load %arg2[%c0, %c0_1] : memref<8x128xf32, #tpu.memory_space<vmem>>, vector<8x128xf32>
    %4 = arith.truncf %3 : vector<8x128xf32> to vector<8x128xbf16>
    %c0_2 = arith.constant 0 : index
    %c0_3 = arith.constant 0 : index
    %5 = vector.load %arg3[%c0_2, %c0_3] : memref<128x256xbf16, #tpu.memory_space<vmem>>, vector<128x256xbf16>
    %cst = arith.constant dense<0.000000e+00> : vector<8x256xf32>
    %6 = tpu.matmul %4, %5, %cst {dimension_numbers = #tpu.dot_dimension_numbers<[1], [0], [0], [1], [0, 0, 1, 1], [], []>} : vector<8x128xbf16>, vector<128x256xbf16>, vector<8x256xf32> -> vector<8x256xf32>
    %c0_4 = arith.constant 0 : index
    %c0_5 = arith.constant 0 : index
    %7 = vector.load %arg4[%c0_4, %c0_5] : memref<1x256xf32, #tpu.memory_space<vmem>>, vector<1x256xf32>
    %8 = vector.broadcast %7 : vector<1x256xf32> to vector<8x256xf32>
    %9 = arith.addf %6, %8 : vector<8x256xf32>
    %cst_6 = arith.constant 0.000000e+00 : f32
    %10 = vector.broadcast %cst_6 : f32 to vector<8x256xf32>
    %11 = arith.maximumf %9, %10 : vector<8x256xf32>
    %c0_7 = arith.constant 0 : index
    %c0_8 = arith.constant 0 : index
    %12 = vector.load %arg8[%c0_7, %c0_8] : memref<8x128xf32, #tpu.memory_space<vmem>>, vector<8x128xf32>
    %13 = arith.truncf %11 : vector<8x256xf32> to vector<8x256xbf16>
    %c0_9 = arith.constant 0 : index
    %c0_10 = arith.constant 0 : index
    %14 = vector.load %arg5[%c0_9, %c0_10] : memref<256x128xbf16, #tpu.memory_space<vmem>>, vector<256x128xbf16>
    %cst_11 = arith.constant dense<0.000000e+00> : vector<8x128xf32>
    %15 = tpu.matmul %13, %14, %cst_11 {dimension_numbers = #tpu.dot_dimension_numbers<[1], [0], [0], [1], [0, 0, 1, 1], [], []>} : vector<8x256xbf16>, vector<256x128xbf16>, vector<8x128xf32> -> vector<8x128xf32>
    %16 = arith.addf %12, %15 : vector<8x128xf32>
    %c0_12 = arith.constant 0 : index
    %c0_13 = arith.constant 0 : index
    %17 = vector.load %arg8[%c0_12, %c0_13] : memref<8x128xf32, #tpu.memory_space<vmem>>, vector<8x128xf32>
    tpu.vector_store %arg8[%c0_12, %c0_13], %16 {strides = array<i32>} : memref<8x128xf32, #tpu.memory_space<vmem>>, vector<8x128xf32>,
    %c0_i32_14 = arith.constant 0 : i32
    %18 = arith.cmpi eq, %arg1, %c0_i32_14 : i32
    %19 = arith.extui %18 : i1 to i32
    %c0_i32_15 = arith.constant 0 : i32
    %20 = arith.cmpi ne, %19, %c0_i32_15 : i32
    scf.if %20 {
      %c0_16 = arith.constant 0 : index
      %c0_17 = arith.constant 0 : index
      %21 = vector.load %arg8[%c0_16, %c0_17] : memref<8x128xf32, #tpu.memory_space<vmem>>, vector<8x128xf32>
      %c0_18 = arith.constant 0 : index
      %c0_19 = arith.constant 0 : index
      %22 = vector.load %arg6[%c0_18, %c0_19] : memref<1x128xf32, #tpu.memory_space<vmem>>, vector<1x128xf32>
      %23 = vector.broadcast %22 : vector<1x128xf32> to vector<8x128xf32>
      %24 = arith.addf %21, %23 : vector<8x128xf32>
      %c0_20 = arith.constant 0 : index
      %c0_21 = arith.constant 0 : index
      %25 = vector.load %arg7[%c0_20, %c0_21] : memref<8x128xf32, #tpu.memory_space<vmem>>, vector<8x128xf32>
      tpu.vector_store %arg7[%c0_20, %c0_21], %24 {strides = array<i32>} : memref<8x128xf32, #tpu.memory_space<vmem>>, vector<8x128xf32>,
    } else {
    }
    return
  }
  func.func @transform_0(%arg0: i32, %arg1: i32) -> (i32, i32) {
    %c0_i32 = arith.constant 0 : i32
    %c0_i32_0 = arith.constant 0 : i32
    return %arg0, %c0_i32 : i32, i32
  }
  func.func @transform_1(%arg0: i32, %arg1: i32) -> (i32, i32) {
    %c0_i32 = arith.constant 0 : i32
    %c0_i32_0 = arith.constant 0 : i32
    return %c0_i32, %arg1 : i32, i32
  }
  func.func @transform_2(%arg0: i32, %arg1: i32) -> (i32, i32) {
    %c0_i32 = arith.constant 0 : i32
    %c0_i32_0 = arith.constant 0 : i32
    return %c0_i32, %arg1 : i32, i32
  }
  func.func @transform_3(%arg0: i32, %arg1: i32) -> (i32, i32) {
    %c0_i32 = arith.constant 0 : i32
    %c0_i32_0 = arith.constant 0 : i32
    return %arg1, %c0_i32 : i32, i32
  }
  func.func @transform_4(%arg0: i32, %arg1: i32) -> (i32, i32) {
    %c0_i32 = arith.constant 0 : i32
    %c0_i32_0 = arith.constant 0 : i32
    %c0_i32_1 = arith.constant 0 : i32
    return %c0_i32, %c0_i32_0 : i32, i32
  }
  func.func @transform_5(%arg0: i32, %arg1: i32) -> (i32, i32) {
    %c0_i32 = arith.constant 0 : i32
    %c0_i32_0 = arith.constant 0 : i32
    return %arg0, %c0_i32 : i32, i32
  }
}

</mosaic_0001>

<bundles_post_ra>
// kernel: fully_connected.1
= control target key start
LH: loop header
LB: loop body
LE: loop exit
PB: predicated region body
PF: predicated region fallthrough
CT: control target
= control target key end

     0   :  { %10 = vsyncpa [#allocation4], 0  ;;  %s1467_s0 = inlined_call_operand.hbm [shape: f32[16,128], index: 0, kind: input, shape index: {}]   ;;  %s1468_s1 = inlined_call_operand.hbm [shape: bf16[128,256], index: 1, kind: input, shape index: {}]   ;;  %s1469_s2 = inlined_call_operand.vmem [shape: f32[1,256], index: 2, kind: input, shape index: {}]   ;;  %s1470_s3 = inlined_call_operand.hbm [shape: bf16[256,128], index: 3, kind: input, shape index: {}]   ;;  %s1471_s4 = inlined_call_operand.vmem [shape: f32[1,128], index: 4, kind: input, shape index: {}]   ;;  %s1472_s5 = inlined_call_operand.hbm [shape: f32[16,128], index: 5, kind: output, shape index: {}]  }
   0x1   :  { %12 = vsyncpa [#allocation4 + $0x1], 0 }
   0x2   :  { %13 = vsyncpa [#allocation7], 0 }
   0x3   :  { %14 = vsyncpa [#allocation5], 0 }
   0x4   :  { %16 = vsyncpa [#allocation5 + $0x1], 0  ;;  %s1204_s18 = smov 0   ;;  %s1206_s19 = smov 0  }
   0x5   :  { %s1208_s20 = smov 0   ;;  %s1210_s21 = smov 0  }
   0x6   :  { %s1212_s22 = smov 0   ;;  %s1214_s23 = smov 0  }
   0x7 LB: > { %s790_s24 = sadd.s32 4294967295, %s1163_s23   ;;  %s791_s25 = sadd.s32 4294967294, %s1163_s23   ;;  %s1163_s23 = sphi %s1214_s23, %s22_s23   ;;  %s1159_s22 = sphi %s1212_s22, %s1494_s22   ;;  %s1155_s21 = sphi %s1210_s21, %s1493_s21   ;;  %s1151_s20 = sphi %s1208_s20, %s1492_s20   ;;  %s1147_s19 = sphi %s1206_s19, %s1491_s19   ;;  %s1143_s18 = sphi %s1204_s18, %s1490_s18  }
   0x8   : > { %p54_p0 = scmp.ne.s32.totalorder %s1147_s19, %s1143_s18  ;;  %p1238_p1 = scmp.eq.s32.totalorder %s790_s24, 0 }
   0x9   : > { %p1242_p2 = scmp.eq.s32.totalorder %s790_s24, 1  ;;  %p183_p3 = scmp.eq.s32.totalorder %s791_s25, 1 }
   0xa   : > { %s1477_s26 = scalar_select %p1238_p1, 1, 0 }
   0xb   : > { %p1248_p4 = por %p1238_p1, %p54_p0  ;;  %p792_p5 = scmp.ge.s32.totalorder %s1163_s23, 1 }
   0xc   : > { %p1253_p6 = por %p183_p3, %p54_p0  ;;  %p190_p7 = scmp.lt.s32.totalorder %s1163_s23, 3 }
   0xd   : > { %s1479_s28 = scalar_select %p1248_p4, 1, 0 }
   0xe   : > { %s1480_s29 = scalar_select %p1253_p6, 1, 0 }
   0xf   : > { %p1258_p8 = pnand %p792_p5, %p190_p7  ;;  %s1165_s6 = smov [#allocation6]  }
  0x10   : > { %s205_s7 = sshll.u32 %s1165_s6, 4  ;;  %s1166_s9 = smov [#allocation8]   ;;  %s1262_s7 = int_to_ptr.vmem [resolvable:$true] %s205_s7 }
  0x11   : > { %p875_p9 = pneg %p1258_p8  ;;  %s229_s10 = sshll.u32 %s1166_s9, 4  ;;  %s1273_s10 = int_to_ptr.vmem [resolvable:$true] %s229_s10 }
  0x12   : > { %s991_s13 = scalar_lea.hbm %s1468_s1, 2048 }
  0x13   : > { %p1269_p11 = pnand %p875_p9, %p1238_p1  ;;  %p992_p12 = scmp.ne.s32.totalorder %s1468_s1, %s991_s13 }
  0x14   : > { %p998_p5 = scmp.lt.u32.totalorder %s991_s13, %s1468_s1 }
  0x15   : > { %p993_p13 = pneg %p1269_p11 }
  0x17   : > { %p994_p0 = pnand %p993_p13, %p992_p12 }
  0x19   : > { %p995_p3 = pneg %p994_p0 }
  0x1b   : > { %p1000_p7 = pnand %p998_p5, %p995_p3 }
  0x1d   : > { %1003 = shalt.err (!%p1000_p7)
}
  0x1e   : > { %s1004_s24 = scalar_lea.vmem %s1262_s7, 2048  ;;  %p1012_p1 = scmp.lt.s32.totalorder %s1262_s7, %s1262_s7 }
  0x1f   : > { %p1005_p9 = scmp.ne.s32.totalorder %s1262_s7, %s1004_s24  ;;  %p1013_p12 = scmp.lt.s32.totalorder %s1004_s24, %s1004_s24 }
  0x21   : > { %p1007_p10 = pnand %p1005_p9, %p993_p13  ;;  %p1014_p0 = por %p1013_p12, %p1012_p1 }
  0x23   : > { %p1008_p6 = pneg %p1007_p10 }
  0x25   : > { %p1015_p4 = pnand %p1014_p0, %p1008_p6 }
  0x27   : > { %1018 = shalt.err (!%p1015_p4)
}
  0x28   : > { %s1167_s25 = smov 128   ;;  %s1168_s6 = smov 8  }
  0x29   : > { %878 = dma.hbm_to_vmem [thread:$0]  (!%p1269_p11), %s1468_s1, 2048, %s1262_s7, [#allocation7], %s1167_s25, %s1167_s25, %s1168_s6  }
  0x2a   : > { %s1019_s14 = scalar_lea.hbm %s1470_s3, 2048 }
  0x2b   : > { %p1020_p1 = scmp.ne.s32.totalorder %s1470_s3, %s1019_s14  ;;  %p1026_p10 = scmp.lt.u32.totalorder %s1019_s14, %s1470_s3 }
  0x2d   : > { %p1022_p4 = pnand %p1020_p1, %p993_p13 }
  0x2f   : > { %p1023_p6 = pneg %p1022_p4 }
  0x31   : > { %p1028_p3 = pnand %p1026_p10, %p1023_p6 }
  0x33   : > { %1031 = shalt.err (!%p1028_p3)
}
  0x34   : > { %s1032_s7 = scalar_lea.vmem %s1273_s10, 2048  ;;  %p1040_p12 = scmp.lt.s32.totalorder %s1273_s10, %s1273_s10 }
  0x35   : > { %p1033_p5 = scmp.ne.s32.totalorder %s1273_s10, %s1032_s7  ;;  %p1041_p0 = scmp.lt.s32.totalorder %s1032_s7, %s1032_s7 }
  0x37   : > { %p1035_p7 = pnand %p1033_p5, %p993_p13  ;;  %p1042_p1 = por %p1041_p0, %p1040_p12 }
  0x39   : > { %p1036_p9 = pneg %p1035_p7 }
  0x3b   : > { %p1043_p4 = pnand %p1042_p1, %p1036_p9 }
  0x3d   : > { %1046 = shalt.err (!%p1043_p4)
}
  0x3e   : > { %s1169_s25 = smov 64   ;;  %s1170_s6 = smov 4  }
  0x3f   : > { %881 = dma.hbm_to_vmem [thread:$0]  (!%p1269_p11), %s1470_s3, 2048, %s1273_s10, [#allocation7], %s1169_s25, %s1169_s25, %s1170_s6  }
  0x40   : > { %s34_s12 = sadd.s32 1, %s1159_s22  ;;  %s41_s13 = sadd.s32 1, %s1151_s20 }
  0x41   : > { %p36_p13 = scmp.ge.s32.totalorder %s34_s12, 2  ;;  %p48_p6 = scmp.ne.s32.totalorder %s1151_s20, %s1147_s19 }
  0x42   : > { %p49_p10 = scmp.eq.s32.totalorder %s1163_s23, 0  ;;  %p892_p3 = scmp.lt.s32.totalorder %s1163_s23, 2 }
  0x43   : > { %s1496_s12 = smov (%p36_p13, %s34_s12), 0  ;;  %p1337_p7 = por %p1242_p2, %p48_p6 }
  0x44   : > { %p50_p5 = por %p49_p10, %p48_p6  ;;  %s38_s8 = ssub.s32 %s1159_s22, %s1496_s12 }
  0x45   : > { %s1483_s14 = scalar_select %p1337_p7, 1, 0 }
  0x46   : > { %s246_s15 = sand.u32 1, %s1151_s20   ;;  %p39_p9 = scmp.eq.s32.totalorder %s38_s8, 0 }
  0x47   : > { %s797_s10 = sshll.u32 %s246_s15, 3  ;;  %s798_s16 = sshll.u32 %s1159_s22, 7 }
  0x48   : > { %s1346_s17 = scalar_select %p39_p9, %s1151_s20, %s41_s13  }
  0x49   : > { %s1351_s25 = scalar_lea.hbm %s1467_s0, %s798_s16  ;;  %s250_s27 = scalar_lea.vmem [#allocation3], %s797_s10 }
  0x4a   : > { %s257_s6 = sshll.u32 %s250_s27, 4  ;;  %p1355_p2 = pnand %p892_p3, %p50_p5  ;;  %s1359_s6 = int_to_ptr.vmem [resolvable:$true] %s257_s6 }
  0x4b   : > { %s247_s11 = scalar_lea.sflag [#allocation4], %s246_s15  ;;  %s1047_s13 = scalar_lea.hbm %s1351_s25, 128 }
  0x4c   : > { %p1048_p11 = scmp.ne.s32.totalorder %s1351_s25, %s1047_s13  ;;  %p1049_p12 = pneg %p1355_p2 }
  0x4d   : > { %s1052_s16 = scalar_lea.hbm %s1467_s0, 256  ;;  %p1053_p4 = scmp.lt.u32.totalorder %s1351_s25, %s1467_s0 }
  0x4e   : > { %p1050_p0 = pnand %p1049_p12, %p1048_p11  ;;  %p1054_p13 = scmp.lt.u32.totalorder %s1052_s16, %s1047_s13 }
  0x4f   : > { %p1056_p10 = scmp.lt.u32.totalorder %s1047_s13, %s1351_s25 }
  0x50   : > { %p1051_p1 = pneg %p1050_p0  ;;  %p1055_p6 = por %p1054_p13, %p1053_p4 }
  0x52   : > { %p1057_p3 = por %p1056_p10, %p1055_p6 }
  0x54   : > { %p1058_p5 = pnand %p1057_p3, %p1051_p1 }
  0x56   : > { %1061 = shalt.err (!%p1058_p5)
}
  0x57   : > { %s1062_s15 = scalar_lea.vmem %s1359_s6, 128  ;;  %s1171_s27 = smov [#allocation3]  }
  0x58   : > { %p1063_p9 = scmp.ne.s32.totalorder %s1359_s6, %s1062_s15  ;;  %s1067_s8 = sshll.u32 %s1171_s27, 4  ;;  %s1068_s8 = int_to_ptr.vmem [resolvable:$false] %s1067_s8 }
  0x59   : > { %s1069_s10 = scalar_lea.vmem %s1068_s8, 256  ;;  %p1070_p7 = scmp.lt.s32.totalorder %s1359_s6, %s1068_s8 }
  0x5a   : > { %p1065_p11 = pnand %p1063_p9, %p1049_p12  ;;  %p1071_p4 = scmp.lt.s32.totalorder %s1069_s10, %s1062_s15 }
  0x5c   : > { %p1066_p0 = pneg %p1065_p11  ;;  %p1072_p13 = por %p1071_p4, %p1070_p7 }
  0x5e   : > { %p1073_p6 = pnand %p1072_p13, %p1066_p0 }
  0x60   : > { %1076 = shalt.err (!%p1073_p6)
}
  0x61   : > { %885 = dma.hbm_to_vmem [thread:$0]  (!%p1355_p2), %s1351_s25, 128, %s1359_s6, %s247_s11  }
  0x62   : > { %266 = sbr.rel (%p1258_p8) target bundleno = 593 (0x251), region = 40  ;;  %s1389_s13 = sand.u32 (!%p1258_p8), 1, %s1147_s19  }
  0x63   : > { %s800_s16 = sshll.u32 (!%p1258_p8), %s1389_s13, 3  ;;  %s269_s24 = scalar_lea.sflag (!%p1258_p8), [#allocation4], %s1389_s13 }
  0x64   : > { %s1395_s7 = scalar_lea.vmem (!%p1258_p8), [#allocation3], %s800_s16  ;;  %p1485_p7 = scmp.ne.s32.totalorder (!%p1258_p8), %s1479_s28, 0 }
  0x69   : > { %1130 = dma.done.wait (%p1485_p7), %s269_s24, 128  }
  0x6a   : > { %1132 = vsyncadd (%p1485_p7), %s269_s24, 4294967168  ;;  %p1486_p2 = scmp.ne.s32.totalorder %s1477_s26, 0 }
  0x6c   : > { %1134 = dma.done.wait (%p1486_p2), [#allocation7], 4096  }
  0x6d   : > { %1136 = vsyncadd (%p1486_p2), [#allocation7], 4294963200  ;;  %v1172_v0 = vmov 0   ;;  %v951_v1 = vld [vmem:[#allocation6 + $0x4] ss:$8 sps:$4 sm:$0xff]   ;;  %v979_v15 = vld [vmem:[#allocation8 + $0x50] sm:$0xff]   ;;  %v344_v35 = vlaneseq }
  0x6e   : > { %466 = vmatprep.mubr.bf16.mxu0 %v1172_v0  ;;  %v953_v2 = vld [vmem:[#allocation6] ss:$8 sps:$4 sm:$0xff]   ;;  %434 = vmatprep.subr.bf16.mxu0 %v951_v1  ;;  %v954_v3 = vld [vmem:[#allocation6 + $0x14] ss:$8 sps:$4 sm:$0xff]   ;;  %v956_v4 = vld [vmem:[#allocation6 + $0x10] ss:$8 sps:$4 sm:$0xff]  }
  0x6f   : > { %435 = vmatpush1.bf16.msra.mxu0 %v953_v2  ;;  %v957_v5 = vld [vmem:[#allocation6 + $0x24] ss:$8 sps:$4 sm:$0xff]   ;;  %v959_v6 = vld [vmem:[#allocation6 + $0x20] ss:$8 sps:$4 sm:$0xff]   ;;  %v960_v7 = vld [vmem:[#allocation6 + $0x34] ss:$8 sps:$4 sm:$0xff]  }
  0x70   : > { %436 = vmatprep.subr.bf16.mxu0 %v954_v3  ;;  %v962_v8 = vld [vmem:[#allocation6 + $0x30] ss:$8 sps:$4 sm:$0xff]   ;;  %v963_v9 = vld [vmem:[#allocation6 + $0x44] ss:$8 sps:$4 sm:$0xff]   ;;  %v965_v12 = vld [vmem:[#allocation6 + $0x40] ss:$8 sps:$4 sm:$0xff]  }
  0x71   : > { %v975_v10 = vld [vmem:[#allocation8 + $0x40] sm:$0xff]   ;;  %v977_v13 = vld [vmem:[#allocation8 + $0x48] sm:$0xff]   ;;  %v966_v16 = vld [vmem:[#allocation6 + $0x54] ss:$8 sps:$4 sm:$0xff]   ;;  %v345_v36 = vshrl.u32 %v344_v35, 7  ;;  %s838_s6 = sshll.u32 %s1155_s21, 7 }
  0x72   : > { %v976_v11 = vld [vmem:[#allocation8] sm:$0xff]   ;;  %841 = vmatprep.subr.bf16.mxu1 %v975_v10  ;;  %v978_v14 = vld [vmem:[#allocation8 + $0x8] sm:$0xff]   ;;  %v968_v17 = vld [vmem:[#allocation6 + $0x50] ss:$8 sps:$4 sm:$0xff]   ;;  %s310_s9 = scalar_lea.vmem [#allocation9], %s800_s16  ;;  %s1418_s8 = scalar_lea.hbm %s1472_s5, %s838_s6 }
  0x73   : > { %437 = vmatpush1.bf16.msra.mxu0 %v956_v4  ;;  %842 = vmatpush3.bf16.msra.mxu1 %v976_v11  ;;  %v980_v18 = vld [vmem:[#allocation8 + $0x10] sm:$0xff]   ;;  %v981_v19 = vld [vmem:[#allocation8 + $0x58] sm:$0xff]   ;;  %v969_v20 = vld [vmem:[#allocation6 + $0x64] ss:$8 sps:$4 sm:$0xff]   ;;  %v346_v37 = vsub.s32 0, %v345_v36  ;;  %v350_v39 = vsub.s32 1, %v345_v36 }
  0x74   : > { %438 = vmatprep.subr.bf16.mxu0 %v957_v5  ;;  %843 = vmatprep.subr.bf16.mxu1 %v977_v13  ;;  %v971_v21 = vld [vmem:[#allocation6 + $0x60] ss:$8 sps:$4 sm:$0xff]   ;;  %v972_v22 = vld [vmem:[#allocation6 + $0x74] ss:$8 sps:$4 sm:$0xff]   ;;  %v974_v26 = vld [vmem:[#allocation6 + $0x70] ss:$8 sps:$4 sm:$0xff]  }
  0x75   : > { %v982_v23 = vld [vmem:[#allocation8 + $0x18] sm:$0xff]   ;;  %v983_v24 = vld [vmem:[#allocation8 + $0x60] sm:$0xff]   ;;  %v985_v28 = vld [vmem:[#allocation8 + $0x68] sm:$0xff]   ;;  %s677_s11 = sshll.u32 %s310_s9, 4  ;;  %s664_s10 = scalar_lea.sflag [#allocation5], %s1389_s13  ;;  %s1420_s11 = int_to_ptr.vmem [resolvable:$true] %s677_s11 }
  0x76   : > { %v984_v25 = vld [vmem:[#allocation8 + $0x20] sm:$0xff]   ;;  %v324_v27 = vld [vmem:[%s1395_s7] sm:$0xff]  ;;  %v986_v30 = vld [vmem:[#allocation8 + $0x28] sm:$0xff]   ;;  %s1077_s21 = scalar_lea.vmem %s1420_s11, 128  ;;  %p1487_p12 = scmp.ne.s32.totalorder %s1483_s14, 0 }
  0x77   : > { %439 = vmatpush1.bf16.msra.mxu0 %v959_v6  ;;  %844 = vmatpush3.bf16.msra.mxu1 %v978_v14  ;;  %v325_v29 = vpack.c.bf16 %v324_v27, %v324_v27  ;;  %v987_v31 = vld [vmem:[#allocation8 + $0x70] sm:$0xff]   ;;  %v989_v33 = vld [vmem:[#allocation8 + $0x78] sm:$0xff]   ;;  %p1078_p8 = scmp.ne.s32.totalorder %s1420_s11, %s1077_s21  ;;  %s1173_s16 = smov [#allocation9]  }
  0x78   : > { %440 = vmatprep.subr.bf16.mxu0 %v960_v7  ;;  %845 = vmatprep.subr.bf16.mxu1 %v979_v15  ;;  %v988_v32 = vld [vmem:[#allocation8 + $0x30] sm:$0xff]   ;;  %v990_v34 = vld [vmem:[#allocation8 + $0x38] sm:$0xff]   ;;  %s1081_s24 = sshll.u32 %s1173_s16, 4  ;;  %s1082_s24 = int_to_ptr.vmem [resolvable:$false] %s1081_s24 }
  0x79   : > { %v342_v38 = vld [vmem:[%s1469_s2] sm:$0x3]  ;;  %p1079_p1 = pnand %p1078_p8, %p1487_p12  ;;  %s1083_s7 = scalar_lea.vmem %s1082_s24, 256 }
  0x7a   : > { %v347_v40 = vrot.slane %v342_v38, %v346_v37  ;;  %v351_v41 = vrot.slane %v342_v38, %v350_v39  ;;  %v836_v54 = vld [vmem:[%s1471_s4] ss:$0 sm:$0xff]  ;;  %p1084_p3 = scmp.lt.s32.totalorder %s1420_s11, %s1082_s24  ;;  %p1085_p5 = scmp.lt.s32.totalorder %s1083_s7, %s1077_s21 }
  0x7b   : > { %441 = vmatpush1.bf16.msra.mxu0 %v962_v8  ;;  %846 = vmatpush3.bf16.msra.mxu1 %v980_v18  ;;  %p1080_p10 = pneg %p1079_p1 }
  0x7c   : > { %442 = vmatprep.subr.bf16.mxu0 %v963_v9  ;;  %847 = vmatprep.subr.bf16.mxu1 %v981_v19  ;;  %p1086_p9 = por %p1085_p5, %p1084_p3 }
  0x7e   : > { %p1087_p11 = pnand %p1086_p9, %p1080_p10 }
  0x7f   : > { %443 = vmatpush1.bf16.msra.mxu0 %v965_v12  ;;  %848 = vmatpush3.bf16.msra.mxu1 %v982_v23 }
  0x80   : > { %444 = vmatprep.subr.bf16.mxu0 %v966_v16  ;;  %849 = vmatprep.subr.bf16.mxu1 %v983_v24 }
  0x83   : > { %445 = vmatpush1.bf16.msra.mxu0 %v968_v17  ;;  %850 = vmatpush3.bf16.msra.mxu1 %v984_v25 }
  0x84   : > { %446 = vmatprep.subr.bf16.mxu0 %v969_v20  ;;  %851 = vmatprep.subr.bf16.mxu1 %v985_v28 }
  0x87   : > { %447 = vmatpush1.bf16.msra.mxu0 %v971_v21  ;;  %852 = vmatpush3.bf16.msra.mxu1 %v986_v30 }
  0x88   : > { %448 = vmatprep.subr.bf16.mxu0 %v972_v22  ;;  %853 = vmatprep.subr.bf16.mxu1 %v987_v31 }
  0x8b   : > { %449 = vmatpush1.bf16.msra.mxu0 %v974_v26  ;;  %854 = vmatpush3.bf16.msra.mxu1 %v988_v32 }
  0x8c   : > { %855 = vmatprep.subr.bf16.mxu1 %v989_v33 }
  0x8e   : > { %467 = vmatmul.mubr.bf16.vlgmr.msra.gmra.mrb[0].mxu0 %v325_v29 }
  0x8f   : > { %856 = vmatpush3.bf16.msra.mxu1 %v990_v34 }
 0x161   : > { %v468_v42 = vpop.f32.mrb[0].mxu0 }
 0x162   : > { %v469_v43 = vadd.f32 %v468_v42, %v347_v40  ;;  %v470_v44 = vpop.f32.mrb[1].mxu0 }
 0x163   : > { %v471_v45 = vadd.f32 %v470_v44, %v351_v41  ;;  %v472_v46 = vpop.f32.mrb[2].mxu0 }
 0x164   : > { %v475_v47 = vmax.f32 %v469_v43, 0.0  ;;  %v473_v48 = vpop.f32.mrb[3].mxu0 }
 0x165   : > { %v476_v49 = vmax.f32 %v471_v45, 0.0 }
 0x166   : > { %v478_v51 = vpack.c.bf16 %v475_v47, %v475_v47 }
 0x167   : > { %v479_v50 = vpack.c.bf16 %v476_v49, %v476_v49 }
 0x169   : > { %640 = vmatprep.mubr.bf16.mxu1 %v479_v50 }
 0x16a   : > { %641 = vmatmul.mubr.bf16.vlgmr.msra.gmra.mrb[0].mxu1 %v478_v51 }
 0x23d   : > { %v857_v52 = vpop.f32.mrb[0].mxu1 }
 0x23e   : > { %v858_v53 = vpop.f32.mrb[1].mxu1 }
 0x23f   : > { %v859_v55 = vadd.f32 %v858_v53, %v857_v52  ;;  %v860_v56 = vpop.f32.mrb[2].mxu1 }
 0x240   : > { %v861_v57 = vpop.f32.mrb[3].mxu1 }
 0x241   : > { %v661_v58 = vadd.f32 %v859_v55, %v836_v54 }
 0x243   : > { %662 = vst [vmem:[%s310_s9] sm:$0xff] %v661_v58 }
 0x244   : > { %1090 = shalt.err (!%p1087_p11)
}
 0x245   : > { %s1091_s13 = scalar_lea.hbm %s1418_s8, 128  ;;  %s1095_s30 = scalar_lea.hbm %s1472_s5, 256 }
 0x246   : > { %p1092_p0 = scmp.ne.s32.totalorder %s1418_s8, %s1091_s13  ;;  %p1096_p6 = scmp.lt.u32.totalorder %s1418_s8, %s1472_s5 }
 0x247   : > { %p1097_p7 = scmp.lt.u32.totalorder %s1095_s30, %s1091_s13  ;;  %p1099_p8 = scmp.lt.u32.totalorder %s1091_s13, %s1418_s8 }
 0x248   : > { %p1093_p4 = pnand %p1092_p0, %p1487_p12 }
 0x249   : > { %p1098_p2 = por %p1097_p7, %p1096_p6 }
 0x24a   : > { %p1094_p13 = pneg %p1093_p4 }
 0x24b   : > { %p1100_p1 = por %p1099_p8, %p1098_p2 }
 0x24d   : > { %p1101_p10 = pnand %p1100_p1, %p1094_p13 }
 0x24f   : > { %1104 = shalt.err (!%p1101_p10)
}
 0x250   : > { %873 = dma.vmem_to_hbm [thread:$0]  (%p1487_p12), %s1420_s11, 128, %s1418_s8, %s664_s10  }
 0x251 PF: > { %s689_s9 = sand.u32 1, %s1143_s18   ;;  %p1488_p3 = scmp.ne.s32.totalorder %s1480_s29, 0 }
 0x252   : > { %p1489_p5 = scmp.ge.s32.totalorder %s1163_s23, 2  ;;  %s690_s15 = scalar_lea.sflag [#allocation5], %s689_s9 }
 0x254   : > { %p887_p9 = pnand %p1489_p5, %p1488_p3 }
 0x256   : > { %1138 = dma.done.wait (!%p887_p9), %s690_s15, 128  }
 0x257   : > { %1140 = vsyncadd (!%p887_p9), %s690_s15, 4294967168  ;;  %s22_s23 = sadd.s32 1, %s1163_s23   ;;  %s1490_s18 = smov %s1147_s19 }
 0x258   : > { %p19_p11 = scmp.ge.s32.totalorder %s22_s23, 4   ;;  %s1491_s19 = smov %s1151_s20 }
 0x259   : > { %s1492_s20 = smov %s1346_s17  ;;  %s1493_s21 = smov %s1159_s22 }
 0x25a   : > { %s1494_s22 = smov %s1496_s12  ;;  %21 = sbr.rel (!%p19_p11) target bundleno = 7 (0x7), region = 106 }
 0x261   :  { %695 = vsyncpa [#allocation4], 1 }
 0x262   :  { %697 = vsyncpa [#allocation4 + $0x1], 1 }
 0x263   :  { %698 = vsyncpa [#allocation7], 1 }
 0x264   :  { %699 = vsyncpa [#allocation5], 1 }
 0x265   :  { %701 = vsyncpa [#allocation5 + $0x1], 1 }

</bundles_post_ra>
